<compile_context>
chip_gen: v6e
topology: v6e:2x2x1
jax: 0.10.0
libtpu: 0.0.40
codegen_flags: <defaults>
</compile_context>

<pallas_src>
import functools

import jax
import jax.numpy as jnp
from jax.experimental import pallas as pl
from jax.experimental.pallas import tpu as pltpu


def _fused_linear_kernel(x_ref, w_ref, b_ref, o_ref):
    # One MXU matmul + one bias add per (tile_B, D_pad) output tile.
    acc = jnp.dot(x_ref[...], w_ref[...], preferred_element_type=jnp.float32)
    o_ref[...] = (acc + b_ref[...]).astype(o_ref.dtype)


def _round_up(x, m):
    return ((x + m - 1) // m) * m


@functools.partial(jax.jit, static_argnames=("tile_b_max",))
def multiple_linear_classifiers(x, w1, b1, w2, b2, w3, b3, *, tile_b_max=512):
    """x: [B, D0]; wi: [D_{i-1}, D_i]; bi: [1, D_i]. Returns [B, D_out]."""
    B, D0 = x.shape
    d_out = w3.shape[1]

    # ---- Algebraic fusion of the three affine layers (exact, done in f32) ----
    w_fused = (w1.astype(jnp.float32) @ w2.astype(jnp.float32)) @ w3.astype(jnp.float32)
    b_fused = (b1.astype(jnp.float32) @ w2.astype(jnp.float32)) @ w3.astype(jnp.float32) \
              + b2.astype(jnp.float32) @ w3.astype(jnp.float32) \
              + b3.astype(jnp.float32)

    # ---- Lane-dense output: pad output columns to a multiple of 128 ----
    d_pad = _round_up(d_out, 128)
    if d_pad != d_out:
        w_fused = jnp.pad(w_fused, ((0, 0), (0, d_pad - d_out)))
        b_fused = jnp.pad(b_fused, ((0, 0), (0, d_pad - d_out)))

    # ---- Batch tiling (sublane-aligned rows, Pallas double-buffers tiles) ----
    tile_b = min(tile_b_max, _round_up(B, 8))
    b_pad = _round_up(B, tile_b)
    if b_pad != B:
        x = jnp.pad(x, ((0, b_pad - B), (0, 0)))
    num_tiles = b_pad // tile_b

    itemsize = jnp.dtype(x.dtype).itemsize
    cost = pl.CostEstimate(
        flops=2 * b_pad * D0 * d_pad,
        transcendentals=0,
        bytes_accessed=(b_pad * D0 + D0 * d_pad + d_pad + b_pad * d_pad) * itemsize,
    )

    out_padded = pl.pallas_call(
        _fused_linear_kernel,
        out_shape=jax.ShapeDtypeStruct((b_pad, d_pad), x.dtype),
        grid=(num_tiles,),
        in_specs=[
            pl.BlockSpec((tile_b, D0), lambda i: (i, 0)),    # x tile (pipelined)
            pl.BlockSpec((D0, d_pad), lambda i: (0, 0)),     # fused W (VMEM-resident)
            pl.BlockSpec((1, d_pad), lambda i: (0, 0)),      # fused b (VMEM-resident)
        ],
        out_specs=pl.BlockSpec((tile_b, d_pad), lambda i: (i, 0)),
        compiler_params=pltpu.CompilerParams(
            dimension_semantics=("parallel",),
        ),
        cost_estimate=cost,
    )(x, w_fused, b_fused)

    # Strip row/column padding.
    return out_padded[:B, :d_out]


def init_linear_params(key, fan_in, fan_out):
    """Matches torch.nn.Linear default init: U(-1/sqrt(fan_in), 1/sqrt(fan_in))."""
    kw, kb = jax.random.split(key)
    bound = 1.0 / jnp.sqrt(fan_in)
    # Stored as [fan_in, fan_out] (transpose of PyTorch's [out, in]).
    w = jax.random.uniform(kw, (fan_in, fan_out), jnp.float32, -bound, bound)
    b = jax.random.uniform(kb, (1, fan_out), jnp.float32, -bound, bound)
    return w, b


if __name__ == "__main__":
    # Same convention as the PyTorch module with input_size_list = [32, 64, 48]:
    # layer1: 32->64, layer2: 64->48, layer3: 48->10.
    input_size_list = [32, 64, 48]
    output_size = 10
    batch = 8

    key = jax.random.PRNGKey(0)
    kx, k1, k2, k3 = jax.random.split(key, 4)

    x = jax.random.normal(kx, (batch, input_size_list[0]), jnp.float32)
    w1, b1 = init_linear_params(k1, input_size_list[0], input_size_list[1])
    w2, b2 = init_linear_params(k2, input_size_list[1], input_size_list[2])
    w3, b3 = init_linear_params(k3, input_size_list[2], output_size)

    out = multiple_linear_classifiers(x, w1, b1, w2, b2, w3, b3)
    out = jax.block_until_ready(out)

    # Reference check: layer-by-layer affine chain in plain JAX (f32).
    ref = ((x @ w1 + b1) @ w2 + b2) @ w3 + b3
    assert out.shape == (batch, output_size)
    assert jnp.allclose(out, ref, atol=1e-4, rtol=1e-4), \
        f"max abs err {jnp.max(jnp.abs(out - ref))}"

    print("KERNEL_OK")
</pallas_src>

<mosaic_0001>
module attributes {stable_mosaic.version = 11 : i64} {
  func.func @_fused_linear_kernel(%arg0: i32, %arg1: memref<8x32xf32, #tpu.memory_space<vmem>>, %arg2: memref<32x128xf32, #tpu.memory_space<vmem>>, %arg3: memref<1x128xf32, #tpu.memory_space<vmem>>, %arg4: memref<8x128xf32, #tpu.memory_space<vmem>>) attributes {dimension_semantics = [#tpu.dimension_semantics<parallel>], iteration_bounds = array<i64: 1>, scalar_prefetch = 0 : i64, scratch_operands = 0 : i64, tpu.core_type = #tpu.core_type<tc>, window_params = [{transform_indices = @transform_0, window_bounds = array<i64: 8, 32>}, {pipeline_mode = #tpu.pipeline_mode<synchronous>, transform_indices = @transform_1, window_bounds = array<i64: 32, 128>}, {pipeline_mode = #tpu.pipeline_mode<synchronous>, transform_indices = @transform_2, window_bounds = array<i64: 1, 128>}, {transform_indices = @transform_3, window_bounds = array<i64: 8, 128>}]} {
    %c0 = arith.constant 0 : index
    %c0_0 = arith.constant 0 : index
    %0 = vector.load %arg1[%c0, %c0_0] : memref<8x32xf32, #tpu.memory_space<vmem>>, vector<8x32xf32>
    %c0_1 = arith.constant 0 : index
    %c0_2 = arith.constant 0 : index
    %1 = vector.load %arg2[%c0_1, %c0_2] : memref<32x128xf32, #tpu.memory_space<vmem>>, vector<32x128xf32>
    %cst = arith.constant dense<0.000000e+00> : vector<8x128xf32>
    %2 = tpu.matmul %0, %1, %cst {dimension_numbers = #tpu.dot_dimension_numbers<[1], [0], [0], [1], [0, 0, 1, 1], [], []>} : vector<8x32xf32>, vector<32x128xf32>, vector<8x128xf32> -> vector<8x128xf32>
    %c0_3 = arith.constant 0 : index
    %c0_4 = arith.constant 0 : index
    %3 = vector.load %arg3[%c0_3, %c0_4] : memref<1x128xf32, #tpu.memory_space<vmem>>, vector<1x128xf32>
    %4 = vector.broadcast %3 : vector<1x128xf32> to vector<8x128xf32>
    %5 = arith.addf %2, %4 : vector<8x128xf32>
    %c0_5 = arith.constant 0 : index
    %c0_6 = arith.constant 0 : index
    %6 = vector.load %arg4[%c0_5, %c0_6] : memref<8x128xf32, #tpu.memory_space<vmem>>, vector<8x128xf32>
    tpu.vector_store %arg4[%c0_5, %c0_6], %5 {strides = array<i32>} : memref<8x128xf32, #tpu.memory_space<vmem>>, vector<8x128xf32>,
    return
  }
  func.func @transform_0(%arg0: i32) -> (i32, i32) {
    %c0_i32 = arith.constant 0 : i32
    %c0_i32_0 = arith.constant 0 : i32
    return %arg0, %c0_i32 : i32, i32
  }
  func.func @transform_1(%arg0: i32) -> (i32, i32) {
    %c0_i32 = arith.constant 0 : i32
    %c0_i32_0 = arith.constant 0 : i32
    %c0_i32_1 = arith.constant 0 : i32
    return %c0_i32, %c0_i32_0 : i32, i32
  }
  func.func @transform_2(%arg0: i32) -> (i32, i32) {
    %c0_i32 = arith.constant 0 : i32
    %c0_i32_0 = arith.constant 0 : i32
    %c0_i32_1 = arith.constant 0 : i32
    return %c0_i32, %c0_i32_0 : i32, i32
  }
  func.func @transform_3(%arg0: i32) -> (i32, i32) {
    %c0_i32 = arith.constant 0 : i32
    %c0_i32_0 = arith.constant 0 : i32
    return %arg0, %c0_i32 : i32, i32
  }
}

</mosaic_0001>

<bundles_post_ra>
// kernel: multiple_linear_classifiers.1
= control target key start
LH: loop header
LB: loop body
LE: loop exit
PB: predicated region body
PF: predicated region fallthrough
CT: control target
= control target key end

     0   :  { %v159_v1 = vmov 0.0   ;;  %vm160_vm0 = vmmov 0   ;;  %s203_s0 = inlined_call_operand.vmem [shape: f32[8,32], index: 0, kind: input, shape index: {}]   ;;  %s204_s1 = inlined_call_operand.vmem [shape: f32[32,128], index: 1, kind: input, shape index: {}]   ;;  %s205_s2 = inlined_call_operand.vmem [shape: f32[1,128], index: 2, kind: input, shape index: {}]   ;;  %s206_s3 = inlined_call_operand.hbm [shape: f32[8,128], index: 3, kind: output, shape index: {}]  }
   0x1   :  { %v19_v0 = vld [vmem:[%s204_s1 + $0x18] sm:$0xff]  ;;  %123 = vmatprep.subr.mxu0 %v159_v1  ;;  %v18_v2 = vld [vmem:[%s204_s1 + $0x10] sm:$0xff]  ;;  %131 = vmatprep.mubr.msk.f32.mxu0 %vm160_vm0, %v159_v1 }
   0x2   :  { %124 = vmatpush3.msra.mxu0 %v19_v0 }
   0x3   :  { %8 = vsyncpa [#allocation3], 0  ;;  %125 = vmatprep.subr.mxu0 %v159_v1  ;;  %v17_v3 = vld [vmem:[%s204_s1 + $0x8] sm:$0xff]  ;;  %v16_v4 = vld [vmem:[%s204_s1] sm:$0xff]  ;;  %vm27_vm1 = vcmask 261120   ;;  %s161_s24 = smov [#allocation2]  }
   0x4   :  { %126 = vmatpush3.msra.mxu0 %v18_v2  ;;  %v15_v5 = vld [vmem:[%s203_s0] sm:$0xff]  ;;  %s108_s25 = sshll.u32 %s161_s24, 4  ;;  %s109_s25 = int_to_ptr.vmem [resolvable:$true] %s108_s25 }
   0x5   :  { %127 = vmatprep.subr.mxu0 %v159_v1  ;;  %v116_v6 = vld [vmem:[%s205_s2] ss:$0 sm:$0xff]  ;;  %s137_s1 = scalar_lea.vmem %s109_s25, 128  ;;  %p142_p1 = scmp.lt.s32.totalorder %s109_s25, %s109_s25 }
   0x6   :  { %128 = vmatpush3.msra.mxu0 %v17_v3  ;;  %p138_p0 = scmp.ne.s32.totalorder %s109_s25, %s137_s1  ;;  %p143_p2 = scmp.lt.s32.totalorder %s137_s1, %s137_s1 }
   0x7   :  { %129 = vmatprep.subr.mxu0 %v159_v1 }
   0x8   :  { %130 = vmatpush3.msra.mxu0 %v16_v4  ;;  %p144_p3 = por %p143_p2, %p142_p1 }
   0x9   :  { %132 = vmatmul.mubr.msk.f32.vlgmr.msra.gmra.mxu0 %vm27_vm1, %v15_v5 }
   0xa   :  { %p145_p4 = pnand %p144_p3, %p138_p0 }
  0xc9   :  { %v97_v7 = vpop.f32.mrf.mxu0 }
  0xca   :  { %v98_v8 = vadd.f32 %v116_v6, %v97_v7 }
  0xcb   :  { %v133_v9 = vpop.f32.mrf.mxu0 }
  0xcc   :  { %101 = vst [vmem:[#allocation2] sm:$0xff] %v98_v8 }
  0xcd   :  { %148 = shalt.err (!%p145_p4)
}
  0xce   :  { %111 = dma.vmem_to_hbm [thread:$0]  %s109_s25, 128, %s206_s3, [#allocation3]  }
  0xcf   :  { %157 = dma.done.wait [#allocation3], 128  }
  0xd0   :  { %158 = vsyncadd [#allocation3], 4294967168 }
  0xd1   :  { %115 = vsyncpa [#allocation3], 1 }

</bundles_post_ra>
